<compile_context>
chip_gen: v6e
topology: v6e:2x2x1
jax: 0.10.0
libtpu: 0.0.40
codegen_flags: <defaults>
</compile_context>

<pallas_src>
import jax
import jax.numpy as jnp
from jax.experimental import pallas as pl
from jax.experimental.pallas import tpu as pltpu


def _round_up(n, m):
    return ((n + m - 1) // m) * m


def _pad2(a, rows, cols):
    return jnp.pad(a, ((0, rows - a.shape[0]), (0, cols - a.shape[1])))


def gru_kernel(x_ref, h_ref,
               wzr_h_ref, wzr_x_ref, bzr_ref,
               wh_h_ref, wh_x_ref, bh_ref,
               wo_ref, bo_ref,
               out_ref, hnew_ref):
    Hp = hnew_ref.shape[1]

    x = x_ref[...]                                # (Bp, Ip) bf16
    h = h_ref[...]                                # (Bp, Hp) f32
    h_bf = h.astype(jnp.bfloat16)

    # Fused z/r gates: one (Bp,Hp)@(Hp,2Hp) + one (Bp,Ip)@(Ip,2Hp) matmul.
    # Column layout of the fused weights: [0:Hp] -> z, [Hp:2Hp] -> r.
    zr_pre = (jnp.dot(h_bf, wzr_h_ref[...], preferred_element_type=jnp.float32)
              + jnp.dot(x, wzr_x_ref[...], preferred_element_type=jnp.float32)
              + bzr_ref[...])
    zr = jax.nn.sigmoid(zr_pre)
    z = zr[:, :Hp]
    r = zr[:, Hp:]

    # Candidate: h_cand = tanh(Linear_h(cat(h * r, x)))
    hr_bf = (h * r).astype(jnp.bfloat16)
    h_pre = (jnp.dot(hr_bf, wh_h_ref[...], preferred_element_type=jnp.float32)
             + jnp.dot(x, wh_x_ref[...], preferred_element_type=jnp.float32)
             + bh_ref[...])
    h_cand = jnp.tanh(h_pre)

    # New hidden state (f32 blend), written back over the incoming h buffer.
    h_new = (1.0 - z) * h + z * h_cand
    hnew_ref[...] = h_new

    # Output projection.
    out_ref[...] = (jnp.dot(h_new.astype(jnp.bfloat16), wo_ref[...],
                            preferred_element_type=jnp.float32)
                    + bo_ref[...])


def prepare_params(params, input_size, hidden_size, output_size):
    """One-time weight preparation: split cat(h,x) columns, fuse z/r gates,
    transpose to (in,out), zero-pad to lane-dense multiples of 128, cast to bf16."""
    H, I, O = hidden_size, input_size, output_size
    Hp = _round_up(H, 128)
    Ip = _round_up(I, 128)
    Op = _round_up(O, 128)

    # PyTorch Linear: y = x @ W.T + b with cat order (hidden, x): hidden cols first.
    def split_t(w):
        return w[:, :H].T, w[:, H:].T            # (H,H), (I,H)

    wzh, wzx = split_t(params["wz"])
    wrh, wrx = split_t(params["wr"])
    whh, whx = split_t(params["wh"])

    bf = jnp.bfloat16
    wzr_h = jnp.concatenate([_pad2(wzh, Hp, Hp), _pad2(wrh, Hp, Hp)], axis=1)
    wzr_x = jnp.concatenate([_pad2(wzx, Ip, Hp), _pad2(wrx, Ip, Hp)], axis=1)
    b_zr = jnp.concatenate([jnp.pad(params["bz"], (0, Hp - H)),
                            jnp.pad(params["br"], (0, Hp - H))]).reshape(1, 2 * Hp)

    wh_h = _pad2(whh, Hp, Hp)
    wh_x = _pad2(whx, Ip, Hp)
    b_h = jnp.pad(params["bh"], (0, Hp - H)).reshape(1, Hp)

    wo = _pad2(params["wo"].T, Hp, Op)
    b_o = jnp.pad(params["bo"], (0, Op - O)).reshape(1, Op)

    return {
        "wzr_h": wzr_h.astype(bf), "wzr_x": wzr_x.astype(bf), "b_zr": b_zr,
        "wh_h": wh_h.astype(bf), "wh_x": wh_x.astype(bf), "b_h": b_h,
        "wo": wo.astype(bf), "b_o": b_o,
        "dims": (I, H, O, Ip, Hp, Op),
    }


def ex_gru_forward(x, hidden, prepped):
    """Pallas implementation of ExGRU.forward(x, hidden) -> (output, new_hidden)."""
    I, H, O, Ip, Hp, Op = prepped["dims"]
    B = x.shape[0]
    Bp = _round_up(B, 8)

    x_p = _pad2(x, Bp, Ip).astype(jnp.bfloat16)
    h_p = _pad2(hidden.astype(jnp.float32), Bp, Hp)

    vmem = pl.BlockSpec(memory_space=pltpu.MemorySpace.VMEM)

    out_p, hnew_p = pl.pallas_call(
        gru_kernel,
        out_shape=(
            jax.ShapeDtypeStruct((Bp, Op), jnp.float32),
            jax.ShapeDtypeStruct((Bp, Hp), jnp.float32),
        ),
        in_specs=[vmem] * 10,
        out_specs=(vmem, vmem),
        input_output_aliases={1: 1},   # hidden input buffer reused for new hidden
    )(x_p, h_p,
      prepped["wzr_h"], prepped["wzr_x"], prepped["b_zr"],
      prepped["wh_h"], prepped["wh_x"], prepped["b_h"],
      prepped["wo"], prepped["b_o"])

    return out_p[:B, :O], hnew_p[:B, :H]


def init_params(key, input_size, hidden_size, output_size):
    """Deterministic init mimicking PyTorch nn.Linear default (U(-k, k), k=1/sqrt(fan_in))."""
    ks = jax.random.split(key, 8)
    fan_zrh = input_size + hidden_size
    k1 = 1.0 / jnp.sqrt(fan_zrh)
    k2 = 1.0 / jnp.sqrt(hidden_size)
    u = lambda k, shape, lim: jax.random.uniform(k, shape, jnp.float32, -lim, lim)
    return {
        "wz": u(ks[0], (hidden_size, fan_zrh), k1), "bz": u(ks[1], (hidden_size,), k1),
        "wr": u(ks[2], (hidden_size, fan_zrh), k1), "br": u(ks[3], (hidden_size,), k1),
        "wh": u(ks[4], (hidden_size, fan_zrh), k1), "bh": u(ks[5], (hidden_size,), k1),
        "wo": u(ks[6], (output_size, hidden_size), k2), "bo": u(ks[7], (output_size,), k2),
    }


def ex_gru_reference(x, hidden, params):
    """Pure-JAX f32 reference mirroring the PyTorch forward exactly."""
    combined = jnp.concatenate([hidden, x], axis=1)
    z = jax.nn.sigmoid(combined @ params["wz"].T + params["bz"])
    r = jax.nn.sigmoid(combined @ params["wr"].T + params["br"])
    h = jnp.tanh(jnp.concatenate([hidden * r, x], axis=1) @ params["wh"].T + params["bh"])
    hidden_new = (1.0 - z) * hidden + z * h
    out = hidden_new @ params["wo"].T + params["bo"]
    return out, hidden_new


if __name__ == "__main__":
    batch = 2
    input_size = 16
    hidden_size = 32
    output_size = 2

    key = jax.random.PRNGKey(0)
    kx, kp = jax.random.split(key, 2)

    x = jax.random.normal(kx, (batch, input_size), jnp.float32)
    hidden0 = jnp.zeros((batch, hidden_size), jnp.float32)  # ExGRU.init_hidden
    params = init_params(kp, input_size, hidden_size, output_size)

    # One-time weight preparation (hoisted out of the per-step path).
    prepped = prepare_params(params, input_size, hidden_size, output_size)

    # Step 1 (zero hidden), step 2 (non-zero hidden) to exercise the recurrence.
    out1, h1 = ex_gru_forward(x, hidden0, prepped)
    out2, h2 = ex_gru_forward(x, h1, prepped)
    out2 = jax.block_until_ready(out2)
    h2 = jax.block_until_ready(h2)

    out1_ref, h1_ref = ex_gru_reference(x, hidden0, params)
    out2_ref, h2_ref = ex_gru_reference(x, h1_ref, params)

    # bf16 matmul inputs (f32 accumulation) -> loosened tolerance vs f32 reference.
    tol = dict(atol=5e-2, rtol=5e-2)
    assert jnp.allclose(out1, out1_ref, **tol), "step-1 output mismatch"
    assert jnp.allclose(h1, h1_ref, **tol), "step-1 hidden mismatch"
    assert jnp.allclose(out2, out2_ref, **tol), "step-2 output mismatch"
    assert jnp.allclose(h2, h2_ref, **tol), "step-2 hidden mismatch"

    print("KERNEL_OK")
</pallas_src>

<mosaic_0001>
module attributes {stable_mosaic.version = 11 : i64} {
  func.func @gru_kernel(%arg0: memref<8x128xbf16, #tpu.memory_space<vmem>>, %arg1: memref<8x128xf32, #tpu.memory_space<vmem>>, %arg2: memref<128x256xbf16, #tpu.memory_space<vmem>>, %arg3: memref<128x256xbf16, #tpu.memory_space<vmem>>, %arg4: memref<1x256xf32, #tpu.memory_space<vmem>>, %arg5: memref<128x128xbf16, #tpu.memory_space<vmem>>, %arg6: memref<128x128xbf16, #tpu.memory_space<vmem>>, %arg7: memref<1x128xf32, #tpu.memory_space<vmem>>, %arg8: memref<128x128xbf16, #tpu.memory_space<vmem>>, %arg9: memref<1x128xf32, #tpu.memory_space<vmem>>, %arg10: memref<8x128xf32, #tpu.memory_space<vmem>>, %arg11: memref<8x128xf32, #tpu.memory_space<vmem>>) attributes {dimension_semantics = [], scalar_prefetch = 0 : i64, scratch_operands = 0 : i64, tpu.core_type = #tpu.core_type<tc>} {
    %c0 = arith.constant 0 : index
    %c0_0 = arith.constant 0 : index
    %0 = vector.load %arg0[%c0, %c0_0] : memref<8x128xbf16, #tpu.memory_space<vmem>>, vector<8x128xbf16>
    %c0_1 = arith.constant 0 : index
    %c0_2 = arith.constant 0 : index
    %1 = vector.load %arg1[%c0_1, %c0_2] : memref<8x128xf32, #tpu.memory_space<vmem>>, vector<8x128xf32>
    %2 = arith.truncf %1 : vector<8x128xf32> to vector<8x128xbf16>
    %c0_3 = arith.constant 0 : index
    %c0_4 = arith.constant 0 : index
    %3 = vector.load %arg2[%c0_3, %c0_4] : memref<128x256xbf16, #tpu.memory_space<vmem>>, vector<128x256xbf16>
    %cst = arith.constant dense<0.000000e+00> : vector<8x256xf32>
    %4 = tpu.matmul %2, %3, %cst {dimension_numbers = #tpu.dot_dimension_numbers<[1], [0], [0], [1], [0, 0, 1, 1], [], []>} : vector<8x128xbf16>, vector<128x256xbf16>, vector<8x256xf32> -> vector<8x256xf32>
    %c0_5 = arith.constant 0 : index
    %c0_6 = arith.constant 0 : index
    %5 = vector.load %arg3[%c0_5, %c0_6] : memref<128x256xbf16, #tpu.memory_space<vmem>>, vector<128x256xbf16>
    %cst_7 = arith.constant dense<0.000000e+00> : vector<8x256xf32>
    %6 = tpu.matmul %0, %5, %cst_7 {dimension_numbers = #tpu.dot_dimension_numbers<[1], [0], [0], [1], [0, 0, 1, 1], [], []>} : vector<8x128xbf16>, vector<128x256xbf16>, vector<8x256xf32> -> vector<8x256xf32>
    %7 = arith.addf %4, %6 : vector<8x256xf32>
    %c0_8 = arith.constant 0 : index
    %c0_9 = arith.constant 0 : index
    %8 = vector.load %arg4[%c0_8, %c0_9] : memref<1x256xf32, #tpu.memory_space<vmem>>, vector<1x256xf32>
    %9 = vector.broadcast %8 : vector<1x256xf32> to vector<8x256xf32>
    %10 = arith.addf %7, %9 : vector<8x256xf32>
    %11 = arith.negf %10 : vector<8x256xf32>
    %12 = math.exp %11 : vector<8x256xf32>
    %cst_10 = arith.constant 1.000000e+00 : f32
    %13 = vector.broadcast %cst_10 : f32 to vector<8x256xf32>
    %14 = arith.addf %13, %12 : vector<8x256xf32>
    %15 = arith.divf %13, %14 : vector<8x256xf32>
    %16 = vector.extract_strided_slice %15 {offsets = [0, 0], sizes = [8, 128], strides = [1, 1]} : vector<8x256xf32> to vector<8x128xf32>
    %17 = vector.extract_strided_slice %15 {offsets = [0, 128], sizes = [8, 128], strides = [1, 1]} : vector<8x256xf32> to vector<8x128xf32>
    %18 = arith.mulf %1, %17 : vector<8x128xf32>
    %19 = arith.truncf %18 : vector<8x128xf32> to vector<8x128xbf16>
    %c0_11 = arith.constant 0 : index
    %c0_12 = arith.constant 0 : index
    %20 = vector.load %arg5[%c0_11, %c0_12] : memref<128x128xbf16, #tpu.memory_space<vmem>>, vector<128x128xbf16>
    %cst_13 = arith.constant dense<0.000000e+00> : vector<8x128xf32>
    %21 = tpu.matmul %19, %20, %cst_13 {dimension_numbers = #tpu.dot_dimension_numbers<[1], [0], [0], [1], [0, 0, 1, 1], [], []>} : vector<8x128xbf16>, vector<128x128xbf16>, vector<8x128xf32> -> vector<8x128xf32>
    %c0_14 = arith.constant 0 : index
    %c0_15 = arith.constant 0 : index
    %22 = vector.load %arg6[%c0_14, %c0_15] : memref<128x128xbf16, #tpu.memory_space<vmem>>, vector<128x128xbf16>
    %cst_16 = arith.constant dense<0.000000e+00> : vector<8x128xf32>
    %23 = tpu.matmul %0, %22, %cst_16 {dimension_numbers = #tpu.dot_dimension_numbers<[1], [0], [0], [1], [0, 0, 1, 1], [], []>} : vector<8x128xbf16>, vector<128x128xbf16>, vector<8x128xf32> -> vector<8x128xf32>
    %24 = arith.addf %21, %23 : vector<8x128xf32>
    %c0_17 = arith.constant 0 : index
    %c0_18 = arith.constant 0 : index
    %25 = vector.load %arg7[%c0_17, %c0_18] : memref<1x128xf32, #tpu.memory_space<vmem>>, vector<1x128xf32>
    %26 = vector.broadcast %25 : vector<1x128xf32> to vector<8x128xf32>
    %27 = arith.addf %24, %26 : vector<8x128xf32>
    %28 = math.tanh %27 : vector<8x128xf32>
    %cst_19 = arith.constant 1.000000e+00 : f32
    %29 = vector.broadcast %cst_19 : f32 to vector<8x128xf32>
    %30 = arith.subf %29, %16 : vector<8x128xf32>
    %31 = arith.mulf %30, %1 : vector<8x128xf32>
    %32 = arith.mulf %16, %28 : vector<8x128xf32>
    %33 = arith.addf %31, %32 : vector<8x128xf32>
    %c0_20 = arith.constant 0 : index
    %c0_21 = arith.constant 0 : index
    %34 = vector.load %arg11[%c0_20, %c0_21] : memref<8x128xf32, #tpu.memory_space<vmem>>, vector<8x128xf32>
    tpu.vector_store %arg11[%c0_20, %c0_21], %33 {strides = array<i32>} : memref<8x128xf32, #tpu.memory_space<vmem>>, vector<8x128xf32>,
    %35 = arith.truncf %33 : vector<8x128xf32> to vector<8x128xbf16>
    %c0_22 = arith.constant 0 : index
    %c0_23 = arith.constant 0 : index
    %36 = vector.load %arg8[%c0_22, %c0_23] : memref<128x128xbf16, #tpu.memory_space<vmem>>, vector<128x128xbf16>
    %cst_24 = arith.constant dense<0.000000e+00> : vector<8x128xf32>
    %37 = tpu.matmul %35, %36, %cst_24 {dimension_numbers = #tpu.dot_dimension_numbers<[1], [0], [0], [1], [0, 0, 1, 1], [], []>} : vector<8x128xbf16>, vector<128x128xbf16>, vector<8x128xf32> -> vector<8x128xf32>
    %c0_25 = arith.constant 0 : index
    %c0_26 = arith.constant 0 : index
    %38 = vector.load %arg9[%c0_25, %c0_26] : memref<1x128xf32, #tpu.memory_space<vmem>>, vector<1x128xf32>
    %39 = vector.broadcast %38 : vector<1x128xf32> to vector<8x128xf32>
    %40 = arith.addf %37, %39 : vector<8x128xf32>
    %c0_27 = arith.constant 0 : index
    %c0_28 = arith.constant 0 : index
    %41 = vector.load %arg10[%c0_27, %c0_28] : memref<8x128xf32, #tpu.memory_space<vmem>>, vector<8x128xf32>
    tpu.vector_store %arg10[%c0_27, %c0_28], %40 {strides = array<i32>} : memref<8x128xf32, #tpu.memory_space<vmem>>, vector<8x128xf32>,
    return
  }
}

</mosaic_0001>

<bundles_post_ra>
// kernel: tpu_custom_call.1
= control target key start
LH: loop header
LB: loop body
LE: loop exit
PB: predicated region body
PF: predicated region fallthrough
CT: control target
= control target key end

     0   :  { %17 = vsyncpa [#allocation3], 0  ;;  %s1381_s0 = inlined_call_operand.vmem [shape: bf16[8,128], index: 0, kind: input, shape index: {}]   ;;  %s1382_s1 = inlined_call_operand.hbm [shape: f32[8,128], index: 1, kind: input, shape index: {}, may-alias: {1,11}]   ;;  %s1383_s2 = inlined_call_operand.hbm [shape: bf16[128,256], index: 2, kind: input, shape index: {}]   ;;  %s1384_s3 = inlined_call_operand.hbm [shape: bf16[128,256], index: 3, kind: input, shape index: {}]   ;;  %s1385_s4 = inlined_call_operand.vmem [shape: f32[1,256], index: 4, kind: input, shape index: {}]   ;;  %s1386_s5 = inlined_call_operand.hbm [shape: bf16[128,128], index: 5, kind: input, shape index: {}]   ;;  %s1387_s6 = inlined_call_operand.hbm [shape: bf16[128,128], index: 6, kind: input, shape index: {}]   ;;  %s1388_s7 = inlined_call_operand.vmem [shape: f32[1,128], index: 7, kind: input, shape index: {}]   ;;  %s1389_s8 = inlined_call_operand.hbm [shape: bf16[128,128], index: 8, kind: input, shape index: {}]   ;;  %s1390_s9 = inlined_call_operand.vmem [shape: f32[1,128], index: 9, kind: input, shape index: {}]   ;;  %s1391_s10 = inlined_call_operand.hbm [shape: f32[8,128], index: 10, kind: output, shape index: {0}]   ;;  %s1392_s11 = inlined_call_operand.hbm [shape: f32[8,128], index: 11, kind: output, shape index: {1}, may-alias: {1,11}]  }
   0x1   :  { %18 = vsyncpa [#allocation6], 0 }
   0x2   :  { %19 = vsyncpa [#allocation9], 0 }
   0x3   :  { %20 = vsyncpa [#allocation12], 0 }
   0x4   :  { %21 = vsyncpa [#allocation4], 0 }
   0x5   :  { %22 = vsyncpa [#allocation15], 0  ;;  %s1208_s17 = smov [#allocation5]  }
   0x6   :  { %s40_s18 = sshll.u32 %s1208_s17, 4  ;;  %s41_s18 = int_to_ptr.vmem [resolvable:$true] %s40_s18 }
   0x7   :  { %s1044_s19 = scalar_lea.vmem %s41_s18, 2048  ;;  %p1049_p1 = scmp.lt.s32.totalorder %s41_s18, %s41_s18 }
   0x8   :  { %p1045_p0 = scmp.ne.s32.totalorder %s41_s18, %s1044_s19  ;;  %p1050_p2 = scmp.lt.s32.totalorder %s1044_s19, %s1044_s19 }
   0xa   :  { %p1051_p3 = por %p1050_p2, %p1049_p1 }
   0xc   :  { %p1052_p4 = pnand %p1051_p3, %p1045_p0 }
   0xe   :  { %1055 = shalt.err (!%p1052_p4)
}
   0xf   :  { %s1209_s20 = smov 128   ;;  %s1210_s21 = smov 8  }
  0x10   :  { %46 = dma.hbm_to_vmem [thread:$0]  %s1383_s2, 2048, %s41_s18, [#allocation6], %s1209_s20, %s1209_s20, %s1210_s21  }
  0x11   :  { %s1211_s24 = smov [#allocation8]  }
  0x12   :  { %s66_s25 = sshll.u32 %s1211_s24, 4  ;;  %s67_s25 = int_to_ptr.vmem [resolvable:$true] %s66_s25 }
  0x13   :  { %s1064_s26 = scalar_lea.vmem %s67_s25, 1024  ;;  %p1069_p6 = scmp.lt.s32.totalorder %s67_s25, %s67_s25 }
  0x14   :  { %p1065_p5 = scmp.ne.s32.totalorder %s67_s25, %s1064_s26  ;;  %p1070_p7 = scmp.lt.s32.totalorder %s1064_s26, %s1064_s26 }
  0x16   :  { %p1071_p8 = por %p1070_p7, %p1069_p6 }
  0x18   :  { %p1072_p9 = pnand %p1071_p8, %p1065_p5 }
  0x1a   :  { %1075 = shalt.err (!%p1072_p9)
}
  0x1b   :  { %s1212_s27 = smov 64   ;;  %s1213_s28 = smov 4  }
  0x1c   :  { %72 = dma.hbm_to_vmem [thread:$0]  %s1386_s5, 1024, %s67_s25, [#allocation9], %s1212_s27, %s1212_s27, %s1213_s28  }
  0x1d   :  { %s1214_s2 = smov [#allocation2]   ;;  %s1215_s13 = smov [#allocation7]  }
  0x1e   :  { %s31_s12 = sshll.u32 %s1214_s2, 4  ;;  %s52_s14 = sshll.u32 %s1215_s13, 4  ;;  %s32_s12 = int_to_ptr.vmem [resolvable:$true] %s31_s12  ;;  %s53_s14 = int_to_ptr.vmem [resolvable:$true] %s52_s14 }
  0x1f   :  { %s1084_s15 = scalar_lea.vmem %s32_s12, 128  ;;  %p1089_p11 = scmp.lt.s32.totalorder %s32_s12, %s32_s12 }
  0x20   :  { %p1085_p10 = scmp.ne.s32.totalorder %s32_s12, %s1084_s15  ;;  %p1090_p12 = scmp.lt.s32.totalorder %s1084_s15, %s1084_s15 }
  0x22   :  { %p1091_p13 = por %p1090_p12, %p1089_p11 }
  0x24   :  { %p1092_p0 = pnand %p1091_p13, %p1085_p10 }
  0x26   :  { %1095 = shalt.err (!%p1092_p0)
}
  0x27   :  { %34 = dma.hbm_to_vmem [thread:$0]  %s1382_s1, 128, %s32_s12, [#allocation3]  }
  0x28   :  { %s1104_s18 = scalar_lea.vmem %s53_s14, 2048  ;;  %p1109_p2 = scmp.lt.s32.totalorder %s53_s14, %s53_s14 }
  0x29   :  { %p1105_p1 = scmp.ne.s32.totalorder %s53_s14, %s1104_s18  ;;  %p1110_p3 = scmp.lt.s32.totalorder %s1104_s18, %s1104_s18 }
  0x2b   :  { %p1111_p4 = por %p1110_p3, %p1109_p2 }
  0x2d   :  { %p1112_p5 = pnand %p1111_p4, %p1105_p1 }
  0x2f   :  { %1115 = shalt.err (!%p1112_p5)
}
  0x30   :  { %58 = dma.hbm_to_vmem [thread:$0]  %s1384_s3, 2048, %s53_s14, [#allocation6], %s1209_s20, %s1209_s20, %s1210_s21  }
  0x31   :  { %s1216_s22 = smov [#allocation10]   ;;  %s1217_s24 = smov [#allocation11]  }
  0x32   :  { %s78_s23 = sshll.u32 %s1216_s22, 4  ;;  %s92_s25 = sshll.u32 %s1217_s24, 4  ;;  %s79_s23 = int_to_ptr.vmem [resolvable:$true] %s78_s23  ;;  %s93_s25 = int_to_ptr.vmem [resolvable:$true] %s92_s25 }
  0x33   :  { %s1124_s1 = scalar_lea.vmem %s79_s23, 1024  ;;  %p1129_p7 = scmp.lt.s32.totalorder %s79_s23, %s79_s23 }
  0x34   :  { %p1125_p6 = scmp.ne.s32.totalorder %s79_s23, %s1124_s1  ;;  %p1130_p8 = scmp.lt.s32.totalorder %s1124_s1, %s1124_s1 }
  0x36   :  { %p1131_p9 = por %p1130_p8, %p1129_p7 }
  0x38   :  { %p1132_p10 = pnand %p1131_p9, %p1125_p6 }
  0x3a   :  { %1135 = shalt.err (!%p1132_p10)
}
  0x3b   :  { %84 = dma.hbm_to_vmem [thread:$0]  %s1387_s6, 1024, %s79_s23, [#allocation9], %s1212_s27, %s1212_s27, %s1213_s28  }
  0x3c   :  { %s1144_s3 = scalar_lea.vmem %s93_s25, 1024  ;;  %p1149_p12 = scmp.lt.s32.totalorder %s93_s25, %s93_s25 }
  0x3d   :  { %p1145_p11 = scmp.ne.s32.totalorder %s93_s25, %s1144_s3  ;;  %p1150_p13 = scmp.lt.s32.totalorder %s1144_s3, %s1144_s3 }
  0x3f   :  { %p1151_p0 = por %p1150_p13, %p1149_p12 }
  0x41   :  { %p1152_p1 = pnand %p1151_p0, %p1145_p11 }
  0x43   :  { %1155 = shalt.err (!%p1152_p1)
}
  0x44   :  { %98 = dma.hbm_to_vmem [thread:$0]  %s1389_s8, 1024, %s93_s25, [#allocation12], %s1212_s27, %s1212_s27, %s1213_s28  }
  0x45   :  { %1196 = dma.done.wait [#allocation3], 128  }
  0x46   :  { %1197 = vsyncadd [#allocation3], 4294967168 }
  0x47   :  { %1198 = dma.done.wait [#allocation6], 4096  }
  0x48   :  { %1199 = vsyncadd [#allocation6], 4294963200 }
  0x49   :  { %1200 = dma.done.wait [#allocation9], 2048  }
  0x4a   :  { %1201 = vsyncadd [#allocation9], 4294965248 }
  0x4b   :  { %1202 = dma.done.wait [#allocation12], 1024  }
  0x4c   :  { %1203 = vsyncadd [#allocation12], 4294966272  ;;  %v1218_v0 = vmov 0   ;;  %v954_v1 = vld [vmem:[#allocation7 + $0x74] ss:$8 sps:$4 sm:$0xff]   ;;  %v399_v36 = vlaneseq  ;;  %v1219_v42 = vmov 0.0  }
  0x4d   :  { %267 = vmatprep.mubr.bf16.mxu0 %v1218_v0  ;;  %388 = vmatprep.mubr.bf16.mxu1 %v1218_v0  ;;  %v956_v2 = vld [vmem:[#allocation5 + $0x74] ss:$8 sps:$4 sm:$0xff]   ;;  %v958_v3 = vld [vmem:[#allocation7 + $0x70] ss:$8 sps:$4 sm:$0xff]   ;;  %v960_v5 = vld [vmem:[#allocation7 + $0x64] ss:$8 sps:$4 sm:$0xff]  }
  0x4e   :  { %235 = vmatprep.subr.bf16.mxu0 %v954_v1  ;;  %v959_v4 = vld [vmem:[#allocation5 + $0x70] ss:$8 sps:$4 sm:$0xff]   ;;  %356 = vmatprep.subr.bf16.mxu1 %v956_v2  ;;  %v962_v6 = vld [vmem:[#allocation5 + $0x64] ss:$8 sps:$4 sm:$0xff]   ;;  %v964_v7 = vld [vmem:[#allocation7 + $0x60] ss:$8 sps:$4 sm:$0xff]  }
  0x4f   :  { %236 = vmatpush1.bf16.msra.mxu0 %v958_v3  ;;  %357 = vmatpush1.bf16.msra.mxu1 %v959_v4  ;;  %v965_v8 = vld [vmem:[#allocation5 + $0x60] ss:$8 sps:$4 sm:$0xff]   ;;  %v966_v9 = vld [vmem:[#allocation7 + $0x54] ss:$8 sps:$4 sm:$0xff]   ;;  %v970_v11 = vld [vmem:[#allocation7 + $0x50] ss:$8 sps:$4 sm:$0xff]  }
  0x50   :  { %237 = vmatprep.subr.bf16.mxu0 %v960_v5  ;;  %358 = vmatprep.subr.bf16.mxu1 %v962_v6  ;;  %v968_v10 = vld [vmem:[#allocation5 + $0x54] ss:$8 sps:$4 sm:$0xff]   ;;  %v971_v12 = vld [vmem:[#allocation5 + $0x50] ss:$8 sps:$4 sm:$0xff]   ;;  %v972_v13 = vld [vmem:[#allocation7 + $0x44] ss:$8 sps:$4 sm:$0xff]  }
  0x51   :  { %v974_v14 = vld [vmem:[#allocation5 + $0x44] ss:$8 sps:$4 sm:$0xff]   ;;  %v976_v15 = vld [vmem:[#allocation7 + $0x40] ss:$8 sps:$4 sm:$0xff]   ;;  %v978_v17 = vld [vmem:[#allocation7 + $0x34] ss:$8 sps:$4 sm:$0xff]  }
  0x52   :  { %v977_v16 = vld [vmem:[#allocation5 + $0x40] ss:$8 sps:$4 sm:$0xff]   ;;  %v980_v18 = vld [vmem:[#allocation5 + $0x34] ss:$8 sps:$4 sm:$0xff]   ;;  %v982_v19 = vld [vmem:[#allocation7 + $0x30] ss:$8 sps:$4 sm:$0xff]  }
  0x53   :  { %238 = vmatpush1.bf16.msra.mxu0 %v964_v7  ;;  %359 = vmatpush1.bf16.msra.mxu1 %v965_v8  ;;  %v983_v20 = vld [vmem:[#allocation5 + $0x30] ss:$8 sps:$4 sm:$0xff]   ;;  %v984_v21 = vld [vmem:[#allocation7 + $0x24] ss:$8 sps:$4 sm:$0xff]   ;;  %v988_v23 = vld [vmem:[#allocation7 + $0x20] ss:$8 sps:$4 sm:$0xff]  }
  0x54   :  { %239 = vmatprep.subr.bf16.mxu0 %v966_v9  ;;  %360 = vmatprep.subr.bf16.mxu1 %v968_v10  ;;  %v986_v22 = vld [vmem:[#allocation5 + $0x24] ss:$8 sps:$4 sm:$0xff]   ;;  %v989_v24 = vld [vmem:[#allocation5 + $0x20] ss:$8 sps:$4 sm:$0xff]   ;;  %v990_v25 = vld [vmem:[#allocation7 + $0x14] ss:$8 sps:$4 sm:$0xff]  }
  0x55   :  { %v992_v26 = vld [vmem:[#allocation5 + $0x14] ss:$8 sps:$4 sm:$0xff]   ;;  %v994_v27 = vld [vmem:[#allocation7 + $0x10] ss:$8 sps:$4 sm:$0xff]   ;;  %v996_v29 = vld [vmem:[#allocation7 + $0x4] ss:$8 sps:$4 sm:$0xff]  }
  0x56   :  { %v995_v28 = vld [vmem:[#allocation5 + $0x10] ss:$8 sps:$4 sm:$0xff]   ;;  %v998_v30 = vld [vmem:[#allocation5 + $0x4] ss:$8 sps:$4 sm:$0xff]   ;;  %v1000_v31 = vld [vmem:[#allocation7] ss:$8 sps:$4 sm:$0xff]  }
  0x57   :  { %240 = vmatpush1.bf16.msra.mxu0 %v970_v11  ;;  %361 = vmatpush1.bf16.msra.mxu1 %v971_v12  ;;  %v1001_v32 = vld [vmem:[#allocation5] ss:$8 sps:$4 sm:$0xff]   ;;  %v1316_v33 = vld [vmem:[#allocation2] sm:$0xff]  ;;  %v1323_v37 = vshrl.u32 %v399_v36, 7  ;;  %v1003_v43 = vld [vmem:[#allocation10 + $0x30] sm:$0xff]   ;;  %vm1220_vm0 = vmmov 0  }
  0x58   :  { %241 = vmatprep.subr.bf16.mxu0 %v972_v13  ;;  %362 = vmatprep.subr.bf16.mxu1 %v974_v14  ;;  %v120_v34 = vld [vmem:[%s1381_s0] sm:$0xf]  ;;  %v122_v35 = vpack.c.bf16 %v1316_v33, %v1316_v33  ;;  %v1005_v45 = vld [vmem:[#allocation10 + $0x28] sm:$0xff]   ;;  %v1006_v46 = vld [vmem:[#allocation8 + $0x30] sm:$0xff]   ;;  %s1221_s30 = smov [#allocation14]  }
  0x59   :  { %v401_v38 = vsub.s32 0, %v1323_v37  ;;  %v1329_v39 = vld [vmem:[%s1385_s4] sm:$0x3]  ;;  %v1007_v47 = vld [vmem:[#allocation10 + $0x20] sm:$0xff]   ;;  %v1008_v48 = vld [vmem:[#allocation8 + $0x28] sm:$0xff]   ;;  %v405_v60 = vsub.s32 1, %v1323_v37 }
  0x5a   :  { %v1002_v41 = vld [vmem:[#allocation10 + $0x38] sm:$0xff]   ;;  %v1010_v50 = vld [vmem:[#allocation8 + $0x20] sm:$0xff]   ;;  %v1011_v51 = vld [vmem:[#allocation10 + $0x10] sm:$0xff]   ;;  %s776_s2 = sshll.u32 %s1221_s30, 4  ;;  %s777_s2 = int_to_ptr.vmem [resolvable:$true] %s776_s2 }
  0x5b   :  { %242 = vmatpush1.bf16.msra.mxu0 %v976_v15  ;;  %363 = vmatpush1.bf16.msra.mxu1 %v977_v16  ;;  %v1332_v40 = vrot.slane %v1329_v39, %v401_v38  ;;  %v1004_v44 = vld [vmem:[#allocation8 + $0x38] sm:$0xff]   ;;  %v1013_v53 = vld [vmem:[#allocation10 + $0x8] sm:$0xff]   ;;  %v1014_v54 = vld [vmem:[#allocation8 + $0x10] sm:$0xff]   ;;  %v406_v0 = vrot.slane %v1329_v39, %v405_v60  ;;  %p1161_p3 = scmp.lt.s32.totalorder %s777_s2, %s777_s2 }
  0x5c   :  { %243 = vmatprep.subr.bf16.mxu0 %v978_v17  ;;  %364 = vmatprep.subr.bf16.mxu1 %v980_v18  ;;  %v1009_v49 = vld [vmem:[#allocation10 + $0x18] sm:$0xff]   ;;  %v1015_v55 = vld [vmem:[#allocation10] sm:$0xff]   ;;  %v1016_v56 = vld [vmem:[#allocation8 + $0x8] sm:$0xff]  }
  0x5d   :  { %v1012_v52 = vld [vmem:[#allocation8 + $0x18] sm:$0xff]   ;;  %v1017_v57 = vld [vmem:[#allocation8] sm:$0xff]   ;;  %v1019_v59 = vld [vmem:[#allocation11 + $0x30] sm:$0xff]  }
  0x5e   :  { %v1018_v58 = vld [vmem:[#allocation11 + $0x38] sm:$0xff]  }
  0x5f   :  { %244 = vmatpush1.bf16.msra.mxu0 %v982_v19  ;;  %365 = vmatpush1.bf16.msra.mxu1 %v983_v20  ;;  %v1020_v20 = vld [vmem:[#allocation11 + $0x28] sm:$0xff]  }
  0x60   :  { %245 = vmatprep.subr.bf16.mxu0 %v984_v21  ;;  %366 = vmatprep.subr.bf16.mxu1 %v986_v22  ;;  %v1021_v21 = vld [vmem:[#allocation11 + $0x20] sm:$0xff]   ;;  %v1022_v22 = vld [vmem:[#allocation11 + $0x18] sm:$0xff]  }
  0x63   :  { %246 = vmatpush1.bf16.msra.mxu0 %v988_v23  ;;  %367 = vmatpush1.bf16.msra.mxu1 %v989_v24  ;;  %v1023_v23 = vld [vmem:[#allocation11 + $0x10] sm:$0xff]   ;;  %v1024_v24 = vld [vmem:[#allocation11 + $0x8] sm:$0xff]  }
  0x64   :  { %247 = vmatprep.subr.bf16.mxu0 %v990_v25  ;;  %368 = vmatprep.subr.bf16.mxu1 %v992_v26  ;;  %v1025_v25 = vld [vmem:[#allocation11] sm:$0xff]  }
  0x67   :  { %248 = vmatpush1.bf16.msra.mxu0 %v994_v27  ;;  %369 = vmatpush1.bf16.msra.mxu1 %v995_v28 }
  0x68   :  { %249 = vmatprep.subr.bf16.mxu0 %v996_v29  ;;  %370 = vmatprep.subr.bf16.mxu1 %v998_v30  ;;  %v842_v30 = vld [vmem:[%s1388_s7] ss:$0 sm:$0xff]  ;;  %s1156_s7 = scalar_lea.vmem %s777_s2, 128 }
  0x69   :  { %p1157_p2 = scmp.ne.s32.totalorder %s777_s2, %s1156_s7  ;;  %p1162_p4 = scmp.lt.s32.totalorder %s1156_s7, %s1156_s7 }
  0x6b   :  { %250 = vmatpush1.bf16.msra.mxu0 %v1000_v31  ;;  %371 = vmatpush1.bf16.msra.mxu1 %v1001_v32  ;;  %p1163_p5 = por %p1162_p4, %p1161_p3 }
  0x6c   :  { %879 = vmatprep.subr.bf16.mxu0 %v1219_v42  ;;  %899 = vmatprep.subr.bf16.mxu1 %v1219_v42 }
  0x6d   :  { %p1164_p6 = pnand %p1163_p5, %p1157_p2 }
  0x6e   :  { %268 = vmatmul.mubr.bf16.vlgmr.msra.gmra.mxu0 %v120_v34  ;;  %389 = vmatmul.mubr.bf16.vlgmr.msra.gmra.mxu1 %v122_v35 }
  0x6f   :  { %880 = vmatpush3.bf16.msra.mxu0 %v1002_v41  ;;  %900 = vmatpush3.bf16.msra.mxu1 %v1004_v44 }
  0x70   :  { %881 = vmatprep.subr.bf16.mxu0 %v1219_v42  ;;  %901 = vmatprep.subr.bf16.mxu1 %v1219_v42 }
  0x71   :  { %895 = vmatprep.mubr.msk.bf16.mxu0 %vm1220_vm0, %v1219_v42  ;;  %915 = vmatprep.mubr.msk.bf16.mxu1 %vm1220_vm0, %v1219_v42 }
  0x73   :  { %882 = vmatpush3.bf16.msra.mxu0 %v1003_v43  ;;  %902 = vmatpush3.bf16.msra.mxu1 %v1006_v46 }
  0x74   :  { %883 = vmatprep.subr.bf16.mxu0 %v1219_v42  ;;  %903 = vmatprep.subr.bf16.mxu1 %v1219_v42 }
  0x77   :  { %884 = vmatpush3.bf16.msra.mxu0 %v1005_v45  ;;  %904 = vmatpush3.bf16.msra.mxu1 %v1008_v48 }
  0x78   :  { %885 = vmatprep.subr.bf16.mxu0 %v1219_v42  ;;  %905 = vmatprep.subr.bf16.mxu1 %v1219_v42 }
  0x7b   :  { %886 = vmatpush3.bf16.msra.mxu0 %v1007_v47  ;;  %906 = vmatpush3.bf16.msra.mxu1 %v1010_v50 }
  0x7c   :  { %887 = vmatprep.subr.bf16.mxu0 %v1219_v42  ;;  %907 = vmatprep.subr.bf16.mxu1 %v1219_v42 }
  0x7f   :  { %888 = vmatpush3.bf16.msra.mxu0 %v1009_v49  ;;  %908 = vmatpush3.bf16.msra.mxu1 %v1012_v52 }
  0x80   :  { %889 = vmatprep.subr.bf16.mxu0 %v1219_v42  ;;  %909 = vmatprep.subr.bf16.mxu1 %v1219_v42 }
  0x83   :  { %890 = vmatpush3.bf16.msra.mxu0 %v1011_v51  ;;  %910 = vmatpush3.bf16.msra.mxu1 %v1014_v54 }
  0x84   :  { %891 = vmatprep.subr.bf16.mxu0 %v1219_v42  ;;  %911 = vmatprep.subr.bf16.mxu1 %v1219_v42 }
  0x87   :  { %892 = vmatpush3.bf16.msra.mxu0 %v1013_v53  ;;  %912 = vmatpush3.bf16.msra.mxu1 %v1016_v56 }
  0x88   :  { %893 = vmatprep.subr.bf16.mxu0 %v1219_v42  ;;  %913 = vmatprep.subr.bf16.mxu1 %v1219_v42 }
  0x8b   :  { %894 = vmatpush3.bf16.msra.mxu0 %v1015_v55  ;;  %914 = vmatpush3.bf16.msra.mxu1 %v1017_v57 }
  0x8c   :  { %919 = vmatprep.subr.bf16.mxu0 %v1219_v42 }
  0x8e   :  { %896 = vmatmul.mubr.bf16.vlgmr.msra.gmra.mxu0 %v120_v34 }
  0x8f   :  { %935 = vmatprep.mubr.msk.bf16.mxu0 %vm1220_vm0, %v1219_v42  ;;  %920 = vmatpush3.bf16.msra.mxu0 %v1018_v58 }
  0x90   :  { %921 = vmatprep.subr.bf16.mxu0 %v1219_v42 }
  0x93   :  { %922 = vmatpush3.bf16.msra.mxu0 %v1019_v59 }
  0x94   :  { %923 = vmatprep.subr.bf16.mxu0 %v1219_v42 }
  0x97   :  { %924 = vmatpush3.bf16.msra.mxu0 %v1020_v20 }
  0x98   :  { %925 = vmatprep.subr.bf16.mxu0 %v1219_v42 }
  0x9b   :  { %926 = vmatpush3.bf16.msra.mxu0 %v1021_v21 }
  0x9c   :  { %927 = vmatprep.subr.bf16.mxu0 %v1219_v42 }
  0x9f   :  { %928 = vmatpush3.bf16.msra.mxu0 %v1022_v22 }
  0xa0   :  { %929 = vmatprep.subr.bf16.mxu0 %v1219_v42 }
  0xa3   :  { %930 = vmatpush3.bf16.msra.mxu0 %v1023_v23 }
  0xa4   :  { %931 = vmatprep.subr.bf16.mxu0 %v1219_v42 }
  0xa7   :  { %932 = vmatpush3.bf16.msra.mxu0 %v1024_v24 }
  0xa8   :  { %933 = vmatprep.subr.bf16.mxu0 %v1219_v42 }
  0xab   :  { %934 = vmatpush3.bf16.msra.mxu0 %v1025_v25 }
 0x12e   :  { %v269_v61 = vpop.f32.mrf.mxu0  ;;  %v390_v62 = vpop.f32.mrf.mxu1 }
 0x12f   :  { %v391_v63 = vadd.f32 %v390_v62, %v269_v61 }
 0x130   :  { %v271_v1 = vpop.f32.mrf.mxu0  ;;  %v392_v2 = vpop.f32.mrf.mxu1 }
 0x131   :  { %v409_v3 = vadd.f32 %v1332_v40, %v391_v63  ;;  %v393_v4 = vadd.f32 %v392_v2, %v271_v1 }
 0x132   :  { %v273_v5 = vpop.f32.mrf.mxu0  ;;  %v394_v6 = vpop.f32.mrf.mxu1 }
 0x133   :  { %v410_v7 = vadd.f32 %v406_v0, %v393_v4  ;;  %v824_v26 = vmul.f32 -1.442695, %v409_v3 }
 0x134   :  { %v274_v8 = vpop.f32.mrf.mxu0  ;;  %v395_v9 = vpop.f32.mrf.mxu1 }
 0x135   :  { %v825_v10 = vmul.f32 -1.442695, %v410_v7 }
 0x137   :  { %1026 = vpow2.f32 %v825_v10 }
 0x144   :  { %v1027_v11 = vpop.eup %1026 }
 0x145   :  { %v418_v12 = vadd.f32 1.0, %v1027_v11 }
 0x147   :  { %1028 = vrcp.f32 %v418_v12 }
 0x148   :  { %1030 = vpow2.f32 %v824_v26 }
 0x14e   :  { %v539_v16 = vpop.f32.mrf.mxu0 }
 0x150   :  { %v897_v17 = vpop.f32.mrf.mxu0 }
 0x152   :  { %v542_v18 = vpop.f32.mrf.mxu0 }
 0x154   :  { %v1029_v13 = vpop.eup %1028  ;;  %v898_v19 = vpop.f32.mrf.mxu0 }
 0x155   :  { %v423_v14 = vmul.f32 %v1029_v13, %v1316_v33  ;;  %v1031_v27 = vpop.eup %1030 }
 0x156   :  { %v417_v28 = vadd.f32 1.0, %v1031_v27 }
 0x157   :  { %v424_v15 = vpack.c.bf16 %v423_v14, %v423_v14 }
 0x158   :  { %1032 = vrcp.f32 %v417_v28 }
 0x159   :  { %916 = vmatmul.mubr.bf16.vlgmr.msra.gmra.mxu1 %v424_v15 }
 0x165   :  { %v1033_v37 = vpop.eup %1032 }
 0x166   :  { %v642_v38 = vsub.f32 1.0, %v1033_v37 }
 0x168   :  { %v643_v40 = vmul.f32 %v642_v38, %v1316_v33 }
 0x219   :  { %v627_v29 = vpop.f32.mrf.mxu1 }
 0x21a   :  { %v628_v31 = vadd.f32 %v627_v29, %v539_v16 }
 0x21b   :  { %v917_v32 = vpop.f32.mrf.mxu1 }
 0x21c   :  { %v640_v34 = vadd.f32 %v842_v30, %v628_v31 }
 0x21d   :  { %v630_v35 = vpop.f32.mrf.mxu1 }
 0x21e   :  { %1034 = vtanh.f32 %v640_v34 }
 0x21f   :  { %v918_v36 = vpop.f32.mrf.mxu1 }
 0x22b   :  { %v1035_v39 = vpop.eup %1034 }
 0x22c   :  { %v644_v41 = vmul.f32 %v1035_v39, %v1033_v37 }
 0x22e   :  { %v645_v42 = vadd.f32 %v644_v41, %v643_v40 }
 0x230   :  { %v647_v43 = vpack.c.bf16 %v645_v42, %v645_v42  ;;  %646 = vst [vmem:[#allocation14] sm:$0xff] %v645_v42 }
 0x232   :  { %936 = vmatmul.mubr.bf16.vlgmr.msra.gmra.mxu0 %v647_v43 }
 0x233   :  { %1167 = shalt.err (!%p1164_p6)
}
 0x234   :  { %779 = dma.vmem_to_hbm [thread:$0]  %s777_s2, 128, %s1392_s11, [#allocation15]   ;;  %v843_v33 = vld [vmem:[%s1390_s9] ss:$0 sm:$0xff] }
 0x235   :  { %s1222_s16 = smov [#allocation13]  }
 0x236   :  { %s766_s17 = sshll.u32 %s1222_s16, 4  ;;  %s767_s17 = int_to_ptr.vmem [resolvable:$true] %s766_s17 }
 0x237   :  { %s1176_s18 = scalar_lea.vmem %s767_s17, 128  ;;  %p1181_p8 = scmp.lt.s32.totalorder %s767_s17, %s767_s17 }
 0x238   :  { %p1177_p7 = scmp.ne.s32.totalorder %s767_s17, %s1176_s18  ;;  %p1182_p9 = scmp.lt.s32.totalorder %s1176_s18, %s1176_s18 }
 0x23a   :  { %p1183_p10 = por %p1182_p9, %p1181_p8 }
 0x23c   :  { %p1184_p11 = pnand %p1183_p10, %p1177_p7 }
 0x2f2   :  { %v753_v44 = vpop.f32.mrf.mxu0 }
 0x2f3   :  { %v754_v45 = vadd.f32 %v843_v33, %v753_v44 }
 0x2f4   :  { %v937_v46 = vpop.f32.mrf.mxu0 }
 0x2f5   :  { %759 = vst [vmem:[#allocation13] sm:$0xff] %v754_v45 }
 0x2f6   :  { %v756_v47 = vpop.f32.mrf.mxu0 }
 0x2f7   :  { %1187 = shalt.err (!%p1184_p11)
}
 0x2f8   :  { %769 = dma.vmem_to_hbm [thread:$0]  %s767_s17, 128, %s1391_s10, [#allocation4]   ;;  %v938_v48 = vpop.f32.mrf.mxu0 }
 0x2f9   :  { %1204 = dma.done.wait [#allocation4], 128  }
 0x2fa   :  { %1205 = vsyncadd [#allocation4], 4294967168 }
 0x2fb   :  { %1206 = dma.done.wait [#allocation15], 128  }
 0x2fc   :  { %1207 = vsyncadd [#allocation15], 4294967168 }
 0x2fd   :  { %786 = vsyncpa [#allocation3], 1 }
 0x2fe   :  { %787 = vsyncpa [#allocation6], 1 }
 0x2ff   :  { %788 = vsyncpa [#allocation9], 1 }
 0x300   :  { %789 = vsyncpa [#allocation12], 1 }
 0x301   :  { %790 = vsyncpa [#allocation4], 1 }
 0x302   :  { %791 = vsyncpa [#allocation15], 1 }

</bundles_post_ra>
